<compile_context>
chip_gen: v7x
topology: tpu7x:2x2x1
jax: 0.10.0
libtpu: 0.0.40
codegen_flags: <defaults>
</compile_context>

<pallas_src>
from collections import defaultdict
from typing import Any, Dict, List

import numpy as np

import jax
import jax.numpy as jnp
from jax.experimental import pallas as pl
from jax.experimental.pallas import tpu as pltpu


# ------------------------------ helpers -------------------------------------

def _round_up(x: int, m: int) -> int:
    return ((x + m - 1) // m) * m


# Per-generation knobs: (row-tile VMEM budget, row-tile cap, vmem_limit_bytes,
# preferred N alignment for large group outputs).
_GEN_CONFIG = {
    "v5e":     (12 << 20, 1024, 32 << 20, 128),   # 0.8 TB/s HBM, 128x128 MXU
    "v6e":     (28 << 20, 2048, 64 << 20, 256),   # 128 MiB VMEM physical
    "v7x":     (20 << 20, 2048, 44 << 20, 256),   # only 64 MiB VMEM / TC
    "unknown": (12 << 20, 1024, 32 << 20, 128),
}


def _tpu_generation() -> str:
    try:
        kind = jax.devices()[0].device_kind.lower()
    except Exception:
        return "unknown"
    if "v5 lite" in kind or "v5e" in kind or "v5litepod" in kind:
        return "v5e"
    if "v6" in kind:
        return "v6e"
    if "7x" in kind or "v7" in kind:
        return "v7x"
    return "unknown"


def _choose_group_size(C: int, D: int, H: int) -> int:
    """Columns per group: target G*D ~ 256-512 (MXU K) and G*H ~ 256 (MXU N)."""
    g_k = max(1, 512 // max(D, 1))
    g_n = max(1, 256 // max(H, 1))
    return max(1, min(C, g_k, g_n))


def _choose_row_tile(R: int, Kg: int, Ng: int, gen: str) -> int:
    """Row tile TR: multiple of 16 (bf16 sublane packing), VMEM-budget aware."""
    budget, cap, _, _ = _GEN_CONFIG.get(gen, _GEN_CONFIG["unknown"])
    if R <= 16:
        return 16                              # bf16 packs 16 rows / sublane group
    # Double-buffered per-row bytes: x tile (bf16) + out tile (bf16).
    per_row = 2 * (Kg * 2) + 2 * (Ng * 2)
    # Row-invariant blocks (weights bf16 + bias f32); counted double-buffered
    # so the no-Buffered(1) fallback also fits the same budget.
    fixed = 2 * (Kg * Ng * 2 + Ng * 4)
    tr_cap = max(16, (budget - fixed) // max(per_row, 1))
    tr = min(_round_up(R, 16), cap, (tr_cap // 16) * 16)
    tr = max(16, tr)
    if gen == "v7x" and R > 16:
        # Keep >= 2 row tiles so ("parallel", ...) semantics can shard row
        # tiles across the two v7x TensorCores (single step -> one TC idles).
        tr = min(tr, max(16, _round_up((R + 1) // 2, 16)))
    return tr


# ------------------------- Pallas kernel (hot path) --------------------------

def _packed_linear_kernel(x_ref, w_ref, b_ref, o_ref):
    # x_ref: [1, TR, Kg]  bf16  (one column-group's features for this row tile)
    # w_ref: [1, Kg, Ng]  bf16  (block-diagonal packed weights of this group)
    # b_ref: [1, 1,  Ng]  f32   (packed biases of this group)
    # o_ref: [TR, Ng]     bf16  (lane-dense output slab: Ng % 128 == 0)
    acc = jnp.dot(x_ref[0], w_ref[0],
                  preferred_element_type=jnp.float32)      # MXU, f32 accumulate
    o_ref[...] = (acc + b_ref[0]).astype(o_ref.dtype)      # f32 epilogue -> bf16 store


def packed_columnar_linear(x_packed: jnp.ndarray,
                           w_packed: jnp.ndarray,
                           b_packed: jnp.ndarray,
                           *, tr: int, vmem_limit_bytes: int) -> jnp.ndarray:
    """Fused per-column linear over (column-group, row-tile) grid.

    x_packed: [G_num, R_pad, Kg] bf16   (R_pad % tr == 0)
    w_packed: [G_num, Kg,  Ng]   bf16   (block-diagonal within each group)
    b_packed: [G_num, 1,   Ng]   f32
    returns:  [R_pad, G_num*Ng]  bf16   (lane-dense: Ng % 128 == 0)
    """
    num_groups, R_pad, Kg = x_packed.shape
    Ng = w_packed.shape[-1]
    grid = (num_groups, R_pad // tr)   # groups outer -> weight block re-DMA'd
                                       # only once per full row sweep

    def build(single_buffer_invariants: bool):
        def inv_spec(shape, index_map):
            # Weight/bias blocks are invariant along the (inner) row axis;
            # double-buffering them is pure VMEM waste.
            if single_buffer_invariants:
                return pl.BlockSpec(shape, index_map,
                                    pipeline_mode=pl.Buffered(1))
            return pl.BlockSpec(shape, index_map)

        return pl.pallas_call(
            _packed_linear_kernel,
            out_shape=jax.ShapeDtypeStruct((R_pad, num_groups * Ng),
                                           jnp.bfloat16),
            grid_spec=pltpu.PrefetchScalarGridSpec(
                num_scalar_prefetch=0,
                grid=grid,
                in_specs=[
                    pl.BlockSpec((1, tr, Kg), lambda g, i: (g, i, 0)),   # rows
                    inv_spec((1, Kg, Ng), lambda g, i: (g, 0, 0)),       # weights
                    inv_spec((1, 1, Ng), lambda g, i: (g, 0, 0)),        # bias
                ],
                out_specs=pl.BlockSpec((tr, Ng), lambda g, i: (i, g)),
            ),
            compiler_params=pltpu.CompilerParams(
                # Row tiles and column groups are independent outputs.
                dimension_semantics=("parallel", "parallel"),
                vmem_limit_bytes=vmem_limit_bytes),
        )

    try:
        return build(True)(x_packed, w_packed, b_packed)
    except Exception:
        # Some jax versions reject pl.Buffered(1) on the top-level pipeline;
        # fall back to default double buffering (budget already accounts for it).
        return build(False)(x_packed, w_packed, b_packed)


# --------------------- RowsToColumnarTransform adapter -----------------------

class RowsToColumnarTransform:
    """JAX/Pallas port of pytext's RowsToColumnarTransform.

    The rows->columnar pivot is host glue (one NumPy pass, one bf16 H2D copy);
    the wrapped transform's compute (per-column Linear) runs fused in a single
    Pallas kernel via per-group block-diagonal weight packing.
    """

    def __init__(self, column_names: List[str], feature_dim: int, hidden_dim: int):
        self.column_names = list(column_names)
        self.feature_dim = D = int(feature_dim)
        self.hidden_dim = H = int(hidden_dim)
        C = len(self.column_names)

        # Deterministic parameter init (synthetic, not a checkpoint load).
        kw, kb = jax.random.split(jax.random.PRNGKey(42))
        self.weights = jax.random.normal(kw, (C, D, H), dtype=jnp.float32) * 0.05
        self.biases = jax.random.normal(kb, (C, H), dtype=jnp.float32) * 0.01

        # Generation-aware tiling/VMEM knobs.
        self.gen = _tpu_generation()
        _, _, self.vmem_limit_bytes, n_align = _GEN_CONFIG.get(
            self.gen, _GEN_CONFIG["unknown"])

        # Column grouping bounds the block-diagonal C^2 waste.
        G = _choose_group_size(C, D, H)
        self.group_size = G
        self.num_groups = -(-C // G)
        Kg = G * D
        Ng = max(128, _round_up(G * H, 128))
        if n_align == 256 and Ng > 128:
            Ng = _round_up(Ng, 256)      # 2x256x256 MXU on v6e/v7x
        self.kg, self.ng = Kg, Ng

        # One-time packing (host side): per-group block-diagonal weights + bias.
        w_np = np.asarray(self.weights)  # single D2H, init-time only
        b_np = np.asarray(self.biases)
        w_packed = np.zeros((self.num_groups, Kg, Ng), dtype=np.float32)
        b_packed = np.zeros((self.num_groups, 1, Ng), dtype=np.float32)
        for c in range(C):
            g, j = divmod(c, G)
            w_packed[g, j * D:(j + 1) * D, j * H:(j + 1) * H] = w_np[c]
            b_packed[g, 0, j * H:(j + 1) * H] = b_np[c]
        self.w_packed = jnp.asarray(w_packed.astype(jnp.bfloat16))  # host cast
        self.b_packed = jnp.asarray(b_packed)                       # f32 epilogue

    def __call__(self, rows: List[Dict[str, Any]]) -> Dict[str, jnp.ndarray]:
        # rows -> columnar pivot: exactly the defaultdict(list) loop semantics
        # of the nn.Module, but values are gathered into a single host array.
        columnar = defaultdict(list)
        for row in rows:
            for column, value in row.items():
                columnar[column].append(value)

        R = len(rows)
        D, H = self.feature_dim, self.hidden_dim
        G, Kg, Ng = self.group_size, self.kg, self.ng

        tr = _choose_row_tile(R, Kg, Ng, self.gen)
        R_pad = _round_up(max(R, 1), tr)

        # Build the [num_groups, R_pad, Kg] pivot entirely on host, cast to
        # bf16 on host -> ONE device transfer at half the bytes.
        x_host = np.zeros((self.num_groups, R_pad, Kg), dtype=np.float32)
        for c, name in enumerate(self.column_names):
            g, j = divmod(c, G)
            x_host[g, :R, j * D:(j + 1) * D] = np.stack(
                [np.asarray(v, dtype=np.float32) for v in columnar[name]], axis=0)
        x_packed = jnp.asarray(x_host.astype(jnp.bfloat16))

        # transform(**columnar): all columns fused (per-group MXU matmuls).
        out = packed_columnar_linear(x_packed, self.w_packed, self.b_packed,
                                     tr=tr, vmem_limit_bytes=self.vmem_limit_bytes)

        # Columnar result keyed by column name (slice the lane-dense slab).
        result = {}
        for c, name in enumerate(self.column_names):
            g, j = divmod(c, G)
            base = g * Ng + j * H
            result[name] = out[:R, base:base + H]
        return result


# --------------------------------- main --------------------------------------

if __name__ == "__main__":
    R = 8          # number of rows (batch)
    D = 32         # per-row feature dim for each column
    H = 16         # transform output dim
    columns = ["text", "label"]
    C = len(columns)

    # Deterministic inputs: ONE device random draw, moved to host once, then
    # sliced into rows-of-dicts (rows format) without R*C tiny device arrays.
    key = jax.random.PRNGKey(0)
    x_all = np.asarray(jax.random.normal(key, (R, C, D), dtype=jnp.float32))
    rows = [{col: x_all[r, c] for c, col in enumerate(columns)} for r in range(R)]

    module = RowsToColumnarTransform(columns, feature_dim=D, hidden_dim=H)
    out = module(rows)
    out = jax.tree_util.tree_map(jax.block_until_ready, out)

    # Pure-JAX reference check (same bf16 inputs, f32 accumulate; the kernel
    # stores bf16, so use a bf16-level tolerance).
    for c, col in enumerate(columns):
        x_col = jnp.asarray(x_all[:, c, :].astype(jnp.bfloat16))     # [R, D]
        w_col = module.weights[c].astype(jnp.bfloat16)               # [D, H]
        ref = (jnp.dot(x_col, w_col, preferred_element_type=jnp.float32)
               + module.biases[c][None, :])                          # [R, H] f32
        got = out[col].astype(jnp.float32)
        assert out[col].shape == (R, H), (col, out[col].shape)
        assert out[col].dtype == jnp.bfloat16, (col, out[col].dtype)
        assert jnp.allclose(got, ref, atol=2e-2, rtol=2e-2), col

    print("KERNEL_OK")
</pallas_src>

<mosaic_0001>
module attributes {stable_mosaic.version = 11 : i64} {
  func.func @_packed_linear_kernel(%arg0: i32, %arg1: i32, %arg2: memref<1x16x64xbf16, #tpu.memory_space<vmem>>, %arg3: memref<1x64x128xbf16, #tpu.memory_space<vmem>>, %arg4: memref<1x1x128xf32, #tpu.memory_space<vmem>>, %arg5: memref<16x128xbf16, #tpu.memory_space<vmem>>) attributes {dimension_semantics = [#tpu.dimension_semantics<parallel>, #tpu.dimension_semantics<parallel>], iteration_bounds = array<i64: 1, 1>, scalar_prefetch = 0 : i64, scratch_operands = 0 : i64, tpu.core_type = #tpu.core_type<tc>, window_params = [{transform_indices = @transform_0, window_bounds = array<i64: 1, 16, 64>}, {pipeline_mode = #tpu.pipeline_mode<synchronous>, transform_indices = @transform_1, window_bounds = array<i64: 1, 64, 128>}, {pipeline_mode = #tpu.pipeline_mode<synchronous>, transform_indices = @transform_2, window_bounds = array<i64: 1, 1, 128>}, {transform_indices = @transform_3, window_bounds = array<i64: 16, 128>}]} {
    %c0 = arith.constant 0 : index
    %c0_0 = arith.constant 0 : index
    %c0_1 = arith.constant 0 : index
    %0 = vector.load %arg2[%c0, %c0_0, %c0_1] : memref<1x16x64xbf16, #tpu.memory_space<vmem>>, vector<1x16x64xbf16>
    %1 = vector.shape_cast %0 : vector<1x16x64xbf16> to vector<16x64xbf16>
    %c0_2 = arith.constant 0 : index
    %c0_3 = arith.constant 0 : index
    %c0_4 = arith.constant 0 : index
    %2 = vector.load %arg3[%c0_2, %c0_3, %c0_4] : memref<1x64x128xbf16, #tpu.memory_space<vmem>>, vector<1x64x128xbf16>
    %3 = vector.shape_cast %2 : vector<1x64x128xbf16> to vector<64x128xbf16>
    %cst = arith.constant dense<0.000000e+00> : vector<16x128xf32>
    %4 = tpu.matmul %1, %3, %cst {dimension_numbers = #tpu.dot_dimension_numbers<[1], [0], [0], [1], [0, 0, 1, 1], [], []>} : vector<16x64xbf16>, vector<64x128xbf16>, vector<16x128xf32> -> vector<16x128xf32>
    %c0_5 = arith.constant 0 : index
    %c0_6 = arith.constant 0 : index
    %c0_7 = arith.constant 0 : index
    %5 = vector.load %arg4[%c0_5, %c0_6, %c0_7] : memref<1x1x128xf32, #tpu.memory_space<vmem>>, vector<1x1x128xf32>
    %6 = vector.shape_cast %5 : vector<1x1x128xf32> to vector<1x128xf32>
    %7 = vector.broadcast %6 : vector<1x128xf32> to vector<16x128xf32>
    %8 = arith.addf %4, %7 : vector<16x128xf32>
    %9 = arith.truncf %8 : vector<16x128xf32> to vector<16x128xbf16>
    %c0_8 = arith.constant 0 : index
    %c0_9 = arith.constant 0 : index
    %10 = vector.load %arg5[%c0_8, %c0_9] : memref<16x128xbf16, #tpu.memory_space<vmem>>, vector<16x128xbf16>
    tpu.vector_store %arg5[%c0_8, %c0_9], %9 {strides = array<i32>} : memref<16x128xbf16, #tpu.memory_space<vmem>>, vector<16x128xbf16>,
    return
  }
  func.func @transform_0(%arg0: i32, %arg1: i32) -> (i32, i32, i32) {
    %c0_i32 = arith.constant 0 : i32
    %c0_i32_0 = arith.constant 0 : i32
    return %arg0, %arg1, %c0_i32 : i32, i32, i32
  }
  func.func @transform_1(%arg0: i32, %arg1: i32) -> (i32, i32, i32) {
    %c0_i32 = arith.constant 0 : i32
    %c0_i32_0 = arith.constant 0 : i32
    %c0_i32_1 = arith.constant 0 : i32
    return %arg0, %c0_i32, %c0_i32_0 : i32, i32, i32
  }
  func.func @transform_2(%arg0: i32, %arg1: i32) -> (i32, i32, i32) {
    %c0_i32 = arith.constant 0 : i32
    %c0_i32_0 = arith.constant 0 : i32
    %c0_i32_1 = arith.constant 0 : i32
    return %arg0, %c0_i32, %c0_i32_0 : i32, i32, i32
  }
  func.func @transform_3(%arg0: i32, %arg1: i32) -> (i32, i32) {
    %c0_i32 = arith.constant 0 : i32
    return %arg1, %arg0 : i32, i32
  }
}

module attributes {stable_mosaic.version = 11 : i64} {
  func.func @_packed_linear_kernel(%arg0: i32, %arg1: i32, %arg2: memref<1x16x64xbf16, #tpu.memory_space<vmem>>, %arg3: memref<1x64x128xbf16, #tpu.memory_space<vmem>>, %arg4: memref<1x1x128xf32, #tpu.memory_space<vmem>>, %arg5: memref<16x128xbf16, #tpu.memory_space<vmem>>) attributes {dimension_semantics = [#tpu.dimension_semantics<parallel>, #tpu.dimension_semantics<parallel>], iteration_bounds = array<i64: 1, 1>, scalar_prefetch = 0 : i64, scratch_operands = 0 : i64, tpu.core_type = #tpu.core_type<tc>, window_params = [{transform_indices = @transform_0, window_bounds = array<i64: 1, 16, 64>}, {transform_indices = @transform_1, window_bounds = array<i64: 1, 64, 128>}, {transform_indices = @transform_2, window_bounds = array<i64: 1, 1, 128>}, {transform_indices = @transform_3, window_bounds = array<i64: 16, 128>}]} {
    %c0 = arith.constant 0 : index
    %c0_0 = arith.constant 0 : index
    %c0_1 = arith.constant 0 : index
    %0 = vector.load %arg2[%c0, %c0_0, %c0_1] : memref<1x16x64xbf16, #tpu.memory_space<vmem>>, vector<1x16x64xbf16>
    %1 = vector.shape_cast %0 : vector<1x16x64xbf16> to vector<16x64xbf16>
    %c0_2 = arith.constant 0 : index
    %c0_3 = arith.constant 0 : index
    %c0_4 = arith.constant 0 : index
    %2 = vector.load %arg3[%c0_2, %c0_3, %c0_4] : memref<1x64x128xbf16, #tpu.memory_space<vmem>>, vector<1x64x128xbf16>
    %3 = vector.shape_cast %2 : vector<1x64x128xbf16> to vector<64x128xbf16>
    %cst = arith.constant dense<0.000000e+00> : vector<16x128xf32>
    %4 = tpu.matmul %1, %3, %cst {dimension_numbers = #tpu.dot_dimension_numbers<[1], [0], [0], [1], [0, 0, 1, 1], [], []>} : vector<16x64xbf16>, vector<64x128xbf16>, vector<16x128xf32> -> vector<16x128xf32>
    %c0_5 = arith.constant 0 : index
    %c0_6 = arith.constant 0 : index
    %c0_7 = arith.constant 0 : index
    %5 = vector.load %arg4[%c0_5, %c0_6, %c0_7] : memref<1x1x128xf32, #tpu.memory_space<vmem>>, vector<1x1x128xf32>
    %6 = vector.shape_cast %5 : vector<1x1x128xf32> to vector<1x128xf32>
    %7 = vector.broadcast %6 : vector<1x128xf32> to vector<16x128xf32>
    %8 = arith.addf %4, %7 : vector<16x128xf32>
    %9 = arith.truncf %8 : vector<16x128xf32> to vector<16x128xbf16>
    %c0_8 = arith.constant 0 : index
    %c0_9 = arith.constant 0 : index
    %10 = vector.load %arg5[%c0_8, %c0_9] : memref<16x128xbf16, #tpu.memory_space<vmem>>, vector<16x128xbf16>
    tpu.vector_store %arg5[%c0_8, %c0_9], %9 {strides = array<i32>} : memref<16x128xbf16, #tpu.memory_space<vmem>>, vector<16x128xbf16>,
    return
  }
  func.func @transform_0(%arg0: i32, %arg1: i32) -> (i32, i32, i32) {
    %c0_i32 = arith.constant 0 : i32
    %c0_i32_0 = arith.constant 0 : i32
    return %arg0, %arg1, %c0_i32 : i32, i32, i32
  }
  func.func @transform_1(%arg0: i32, %arg1: i32) -> (i32, i32, i32) {
    %c0_i32 = arith.constant 0 : i32
    %c0_i32_0 = arith.constant 0 : i32
    %c0_i32_1 = arith.constant 0 : i32
    return %arg0, %c0_i32, %c0_i32_0 : i32, i32, i32
  }
  func.func @transform_2(%arg0: i32, %arg1: i32) -> (i32, i32, i32) {
    %c0_i32 = arith.constant 0 : i32
    %c0_i32_0 = arith.constant 0 : i32
    %c0_i32_1 = arith.constant 0 : i32
    return %arg0, %c0_i32, %c0_i32_0 : i32, i32, i32
  }
  func.func @transform_3(%arg0: i32, %arg1: i32) -> (i32, i32) {
    %c0_i32 = arith.constant 0 : i32
    return %arg1, %arg0 : i32, i32
  }
}

</mosaic_0001>

<bundles_post_ra>
// kernel: tpu_custom_call.1
= control target key start
LH: loop header
LB: loop body
LE: loop exit
PB: predicated region body
PF: predicated region fallthrough
CT: control target
= control target key end

     0   :  { %8 = vsyncpa [#allocation3], 0  ;;  %s355_s0 = inlined_call_operand.hbm [shape: bf16[1,16,64], index: 0, kind: input, shape index: {}]   ;;  %s356_s1 = inlined_call_operand.hbm [shape: bf16[1,64,128], index: 1, kind: input, shape index: {}]   ;;  %s357_s2 = inlined_call_operand.vmem [shape: f32[1,1,128], index: 2, kind: input, shape index: {}]   ;;  %s358_s3 = inlined_call_operand.hbm [shape: bf16[16,128], index: 3, kind: output, shape index: {}]  }
   0x1   :  { %9 = vsyncpa [#allocation6], 0 }
   0x2   :  { %10 = vsyncpa [#allocation4], 0  ;;  %s280_s12 = smov [#allocation2]   ;;  %s208_s16 = scalar_lea.hbm %s355_s0, 128 }
   0x3   :  { %s16_s13 = sshll.u32 %s280_s12, 4  ;;  %p209_p0 = scmp.ne.s32.totalorder %s355_s0, %s208_s16  ;;  %s17_s13 = int_to_ptr.vmem [resolvable:$true] %s16_s13 }
   0x4   :  { %p212_p1 = scmp.lt.u32.totalorder %s208_s16, %s355_s0 }
   0x6   :  { %p214_p2 = pnand %p212_p1, %p209_p0 }
   0x8   :  { %217 = shalt.err (!%p214_p2)
}
   0x9   :  { %s218_s21 = scalar_lea.vmem %s17_s13, 128  ;;  %p223_p4 = scmp.lt.s32.totalorder %s17_s13, %s17_s13 }
   0xa   :  { %p219_p3 = scmp.ne.s32.totalorder %s17_s13, %s218_s21  ;;  %p224_p5 = scmp.lt.s32.totalorder %s218_s21, %s218_s21 }
   0xc   :  { %p225_p6 = por %p224_p5, %p223_p4 }
   0xe   :  { %p226_p7 = pnand %p225_p6, %p219_p3 }
  0x10   :  { %229 = shalt.err (!%p226_p7)
}
  0x11   :  { %s281_s22 = smov 64   ;;  %s282_s23 = smov 4  }
  0x12   :  { %22 = dma.hbm_to_vmem [thread:$0]  %s355_s0, 128, %s17_s13, [#allocation3], %s281_s22, %s281_s22, %s282_s23  }
  0x13   :  { %s283_s26 = smov [#allocation5]   ;;  %s230_s30 = scalar_lea.hbm %s356_s1, 512 }
  0x14   :  { %s28_s27 = sshll.u32 %s283_s26, 4  ;;  %p231_p8 = scmp.ne.s32.totalorder %s356_s1, %s230_s30  ;;  %s29_s27 = int_to_ptr.vmem [resolvable:$true] %s28_s27 }
  0x15   :  { %p234_p9 = scmp.lt.u32.totalorder %s230_s30, %s356_s1 }
  0x17   :  { %p236_p10 = pnand %p234_p9, %p231_p8 }
  0x19   :  { %239 = shalt.err (!%p236_p10)
}
  0x1a   :  { %s240_s8 = scalar_lea.vmem %s29_s27, 512  ;;  %p245_p12 = scmp.lt.s32.totalorder %s29_s27, %s29_s27 }
  0x1b   :  { %p241_p11 = scmp.ne.s32.totalorder %s29_s27, %s240_s8  ;;  %p246_p13 = scmp.lt.s32.totalorder %s240_s8, %s240_s8 }
  0x1d   :  { %p247_p0 = por %p246_p13, %p245_p12 }
  0x1f   :  { %p248_p1 = pnand %p247_p0, %p241_p11 }
  0x21   :  { %251 = shalt.err (!%p248_p1)
}
  0x22   :  { %34 = dma.hbm_to_vmem [thread:$0]  %s356_s1, 512, %s29_s27, [#allocation6], %s281_s22, %s281_s22, %s282_s23  }
  0x23   :  { %274 = dma.done.wait [#allocation3], 128  }
  0x24   :  { %275 = vsyncadd [#allocation3], 4294967168 }
  0x25   :  { %276 = dma.done.wait [#allocation6], 512  }
  0x26   :  { %277 = vsyncadd [#allocation6], 4294966784  ;;  %v284_v0 = vmov 0.0   ;;  %vm285_vm0 = vmmov 0   ;;  %v203_v1 = vld [vmem:[#allocation5] sm:$0xff]   ;;  %v204_v2 = vld [vmem:[#allocation5 + $0x8] sm:$0xff]  }
  0x27   :  { %184 = vmatprep.subr.bf16.mxu0 %v284_v0  ;;  %192 = vmatprep.mubr.msk.bf16.mxu0 %vm285_vm0, %v284_v0  ;;  %v205_v3 = vld [vmem:[#allocation5 + $0x10] sm:$0xff]   ;;  %v206_v4 = vld [vmem:[#allocation5 + $0x18] sm:$0xff]   ;;  %vm90_vm1 = vcmask 523264   ;;  %s286_s11 = smov [#allocation7]  }
  0x28   :  { %185 = vmatpush3.bf16.msra.mxu0 %v203_v1  ;;  %v207_v5 = vld [vmem:[#allocation2] sm:$0xff]   ;;  %s150_s12 = sshll.u32 %s286_s11, 4  ;;  %s151_s12 = int_to_ptr.vmem [resolvable:$true] %s150_s12 }
  0x29   :  { %186 = vmatprep.subr.bf16.mxu0 %v284_v0  ;;  %v163_v6 = vld [vmem:[%s357_s2] ss:$0 sm:$0xff]  ;;  %s252_s13 = scalar_lea.vmem %s151_s12, 128  ;;  %p257_p3 = scmp.lt.s32.totalorder %s151_s12, %s151_s12 }
  0x2a   :  { %p253_p2 = scmp.ne.s32.totalorder %s151_s12, %s252_s13  ;;  %p258_p4 = scmp.lt.s32.totalorder %s252_s13, %s252_s13 }
  0x2c   :  { %187 = vmatpush3.bf16.msra.mxu0 %v204_v2  ;;  %p259_p5 = por %p258_p4, %p257_p3 }
  0x2d   :  { %188 = vmatprep.subr.bf16.mxu0 %v284_v0 }
  0x2e   :  { %p260_p6 = pnand %p259_p5, %p253_p2 }
  0x30   :  { %189 = vmatpush3.bf16.msra.mxu0 %v205_v3 }
  0x31   :  { %190 = vmatprep.subr.bf16.mxu0 %v284_v0 }
  0x34   :  { %191 = vmatpush3.bf16.msra.mxu0 %v206_v4 }
  0x37   :  { %193 = vmatmul.mubr.msk.bf16.vlgmr.msra.gmra.mrb[0].mxu0 %vm90_vm1, %v207_v5 }
 0x10a   :  { %v128_v7 = vpop.f32.mrb[0].mxu0 }
 0x10b   :  { %v194_v8 = vpop.f32.mrb[1].mxu0  ;;  %v129_v10 = vadd.f32 %v163_v6, %v128_v7 }
 0x10c   :  { %v131_v9 = vpop.f32.mrb[2].mxu0 }
 0x10d   :  { %v132_v11 = vadd.f32 %v163_v6, %v131_v9  ;;  %v195_v12 = vpop.f32.mrb[3].mxu0 }
 0x10f   :  { %v177_v13 = vpack.c.bf16 %v132_v11, %v129_v10 }
 0x111   :  { %178 = vst [vmem:[#allocation7] sm:$0xff] %v177_v13  }
 0x112   :  { %263 = shalt.err (!%p260_p6)
}
 0x113   :  { %s264_s15 = scalar_lea.hbm %s358_s3, 128 }
 0x114   :  { %p265_p7 = scmp.ne.s32.totalorder %s358_s3, %s264_s15  ;;  %p268_p8 = scmp.lt.u32.totalorder %s264_s15, %s358_s3 }
 0x116   :  { %p270_p9 = pnand %p268_p8, %p265_p7 }
 0x118   :  { %273 = shalt.err (!%p270_p9)
}
 0x119   :  { %156 = dma.vmem_to_hbm [thread:$0]  %s151_s12, 128, %s358_s3, [#allocation4], %s281_s22, %s281_s22, %s282_s23  }
 0x11a   :  { %278 = dma.done.wait [#allocation4], 128  }
 0x11b   :  { %279 = vsyncadd [#allocation4], 4294967168 }
 0x11c   :  { %160 = vsyncpa [#allocation3], 1 }
 0x11d   :  { %161 = vsyncpa [#allocation6], 1 }
 0x11e   :  { %162 = vsyncpa [#allocation4], 1 }

// kernel: tpu_custom_call.1
= control target key start
LH: loop header
LB: loop body
LE: loop exit
PB: predicated region body
PF: predicated region fallthrough
CT: control target
= control target key end

     0   :  { %8 = vsyncpa [#allocation3], 0  ;;  %s355_s0 = inlined_call_operand.hbm [shape: bf16[1,16,64], index: 0, kind: input, shape index: {}]   ;;  %s356_s1 = inlined_call_operand.hbm [shape: bf16[1,64,128], index: 1, kind: input, shape index: {}]   ;;  %s357_s2 = inlined_call_operand.vmem [shape: f32[1,1,128], index: 2, kind: input, shape index: {}]   ;;  %s358_s3 = inlined_call_operand.hbm [shape: bf16[16,128], index: 3, kind: output, shape index: {}]  }
   0x1   :  { %9 = vsyncpa [#allocation6], 0 }
   0x2   :  { %10 = vsyncpa [#allocation4], 0  ;;  %s280_s12 = smov [#allocation2]   ;;  %s208_s16 = scalar_lea.hbm %s355_s0, 128 }
   0x3   :  { %s16_s13 = sshll.u32 %s280_s12, 4  ;;  %p209_p0 = scmp.ne.s32.totalorder %s355_s0, %s208_s16  ;;  %s17_s13 = int_to_ptr.vmem [resolvable:$true] %s16_s13 }
   0x4   :  { %p212_p1 = scmp.lt.u32.totalorder %s208_s16, %s355_s0 }
   0x6   :  { %p214_p2 = pnand %p212_p1, %p209_p0 }
   0x8   :  { %217 = shalt.err (!%p214_p2)
}
   0x9   :  { %s218_s21 = scalar_lea.vmem %s17_s13, 128  ;;  %p223_p4 = scmp.lt.s32.totalorder %s17_s13, %s17_s13 }
   0xa   :  { %p219_p3 = scmp.ne.s32.totalorder %s17_s13, %s218_s21  ;;  %p224_p5 = scmp.lt.s32.totalorder %s218_s21, %s218_s21 }
   0xc   :  { %p225_p6 = por %p224_p5, %p223_p4 }
   0xe   :  { %p226_p7 = pnand %p225_p6, %p219_p3 }
  0x10   :  { %229 = shalt.err (!%p226_p7)
}
  0x11   :  { %s281_s22 = smov 64   ;;  %s282_s23 = smov 4  }
  0x12   :  { %22 = dma.hbm_to_vmem [thread:$0]  %s355_s0, 128, %s17_s13, [#allocation3], %s281_s22, %s281_s22, %s282_s23  }
  0x13   :  { %s283_s26 = smov [#allocation5]   ;;  %s230_s30 = scalar_lea.hbm %s356_s1, 512 }
  0x14   :  { %s28_s27 = sshll.u32 %s283_s26, 4  ;;  %p231_p8 = scmp.ne.s32.totalorder %s356_s1, %s230_s30  ;;  %s29_s27 = int_to_ptr.vmem [resolvable:$true] %s28_s27 }
  0x15   :  { %p234_p9 = scmp.lt.u32.totalorder %s230_s30, %s356_s1 }
  0x17   :  { %p236_p10 = pnand %p234_p9, %p231_p8 }
  0x19   :  { %239 = shalt.err (!%p236_p10)
}
  0x1a   :  { %s240_s8 = scalar_lea.vmem %s29_s27, 512  ;;  %p245_p12 = scmp.lt.s32.totalorder %s29_s27, %s29_s27 }
  0x1b   :  { %p241_p11 = scmp.ne.s32.totalorder %s29_s27, %s240_s8  ;;  %p246_p13 = scmp.lt.s32.totalorder %s240_s8, %s240_s8 }
  0x1d   :  { %p247_p0 = por %p246_p13, %p245_p12 }
  0x1f   :  { %p248_p1 = pnand %p247_p0, %p241_p11 }
  0x21   :  { %251 = shalt.err (!%p248_p1)
}
  0x22   :  { %34 = dma.hbm_to_vmem [thread:$0]  %s356_s1, 512, %s29_s27, [#allocation6], %s281_s22, %s281_s22, %s282_s23  }
  0x23   :  { %274 = dma.done.wait [#allocation3], 128  }
  0x24   :  { %275 = vsyncadd [#allocation3], 4294967168 }
  0x25   :  { %276 = dma.done.wait [#allocation6], 512  }
  0x26   :  { %277 = vsyncadd [#allocation6], 4294966784  ;;  %v284_v0 = vmov 0.0   ;;  %vm285_vm0 = vmmov 0   ;;  %v203_v1 = vld [vmem:[#allocation5] sm:$0xff]   ;;  %v204_v2 = vld [vmem:[#allocation5 + $0x8] sm:$0xff]  }
  0x27   :  { %184 = vmatprep.subr.bf16.mxu0 %v284_v0  ;;  %192 = vmatprep.mubr.msk.bf16.mxu0 %vm285_vm0, %v284_v0  ;;  %v205_v3 = vld [vmem:[#allocation5 + $0x10] sm:$0xff]   ;;  %v206_v4 = vld [vmem:[#allocation5 + $0x18] sm:$0xff]   ;;  %vm90_vm1 = vcmask 523264   ;;  %s286_s11 = smov [#allocation7]  }
  0x28   :  { %185 = vmatpush3.bf16.msra.mxu0 %v203_v1  ;;  %v207_v5 = vld [vmem:[#allocation2] sm:$0xff]   ;;  %s150_s12 = sshll.u32 %s286_s11, 4  ;;  %s151_s12 = int_to_ptr.vmem [resolvable:$true] %s150_s12 }
  0x29   :  { %186 = vmatprep.subr.bf16.mxu0 %v284_v0  ;;  %v163_v6 = vld [vmem:[%s357_s2] ss:$0 sm:$0xff]  ;;  %s252_s13 = scalar_lea.vmem %s151_s12, 128  ;;  %p257_p3 = scmp.lt.s32.totalorder %s151_s12, %s151_s12 }
  0x2a   :  { %p253_p2 = scmp.ne.s32.totalorder %s151_s12, %s252_s13  ;;  %p258_p4 = scmp.lt.s32.totalorder %s252_s13, %s252_s13 }
  0x2c   :  { %187 = vmatpush3.bf16.msra.mxu0 %v204_v2  ;;  %p259_p5 = por %p258_p4, %p257_p3 }
  0x2d   :  { %188 = vmatprep.subr.bf16.mxu0 %v284_v0 }
  0x2e   :  { %p260_p6 = pnand %p259_p5, %p253_p2 }
  0x30   :  { %189 = vmatpush3.bf16.msra.mxu0 %v205_v3 }
  0x31   :  { %190 = vmatprep.subr.bf16.mxu0 %v284_v0 }
  0x34   :  { %191 = vmatpush3.bf16.msra.mxu0 %v206_v4 }
  0x37   :  { %193 = vmatmul.mubr.msk.bf16.vlgmr.msra.gmra.mrb[0].mxu0 %vm90_vm1, %v207_v5 }
 0x10a   :  { %v128_v7 = vpop.f32.mrb[0].mxu0 }
 0x10b   :  { %v194_v8 = vpop.f32.mrb[1].mxu0  ;;  %v129_v10 = vadd.f32 %v163_v6, %v128_v7 }
 0x10c   :  { %v131_v9 = vpop.f32.mrb[2].mxu0 }
 0x10d   :  { %v132_v11 = vadd.f32 %v163_v6, %v131_v9  ;;  %v195_v12 = vpop.f32.mrb[3].mxu0 }
 0x10f   :  { %v177_v13 = vpack.c.bf16 %v132_v11, %v129_v10 }
 0x111   :  { %178 = vst [vmem:[#allocation7] sm:$0xff] %v177_v13  }
 0x112   :  { %263 = shalt.err (!%p260_p6)
}
 0x113   :  { %s264_s15 = scalar_lea.hbm %s358_s3, 128 }
 0x114   :  { %p265_p7 = scmp.ne.s32.totalorder %s358_s3, %s264_s15  ;;  %p268_p8 = scmp.lt.u32.totalorder %s264_s15, %s358_s3 }
 0x116   :  { %p270_p9 = pnand %p268_p8, %p265_p7 }
 0x118   :  { %273 = shalt.err (!%p270_p9)
}
 0x119   :  { %156 = dma.vmem_to_hbm [thread:$0]  %s151_s12, 128, %s358_s3, [#allocation4], %s281_s22, %s281_s22, %s282_s23  }
 0x11a   :  { %278 = dma.done.wait [#allocation4], 128  }
 0x11b   :  { %279 = vsyncadd [#allocation4], 4294967168 }
 0x11c   :  { %160 = vsyncpa [#allocation3], 1 }
 0x11d   :  { %161 = vsyncpa [#allocation6], 1 }
 0x11e   :  { %162 = vsyncpa [#allocation4], 1 }

</bundles_post_ra>
